<compile_context>
chip_gen: v7x
topology: tpu7x:2x2x1
jax: 0.10.0
libtpu: 0.0.40
codegen_flags: <defaults>
</compile_context>

<pallas_src>
import functools
import math

import jax
import jax.numpy as jnp
from jax import lax
from jax.experimental import pallas as pl
from jax.experimental.pallas import tpu as pltpu


def _round_up(x: int, m: int) -> int:
    return ((x + m - 1) // m) * m


def _static_pow(x, gamma: float):
    """pt**gamma with gamma a static Python float: repeated multiply for small
    integer gamma (no transcendentals), jnp.power fallback otherwise."""
    g = float(gamma)
    if g == int(g) and 0 <= int(g) <= 4:
        gi = int(g)
        if gi == 0:
            return jnp.ones_like(x)
        r = x
        for _ in range(gi - 1):
            r = r * x
        return r
    return jnp.power(x, g)


def _focal_loss_kernel(x_ref, t_ref, w_ref, o_ref, *,
                       gamma: float, alpha: float, num_classes: int):
    f32 = jnp.float32
    x = x_ref[...].astype(f32)          # (TR, LANE) logits
    t = t_ref[...].astype(f32)          # (TR, LANE) one-hot targets
    w_anchor = w_ref[...].astype(f32)   # (TR, K)    anchor weights, K = LANE // C

    lane = x.shape[-1]
    k = w_anchor.shape[-1]

    # Expand anchor weights across classes along the lane axis using the idle
    # MXU:  expand[j, l] = 1  iff  l // num_classes == j.  Each output lane is
    # a single w * 1.0 term, so the expansion is exact in f32.
    j_idx = lax.broadcasted_iota(jnp.int32, (k, lane), 0)
    l_idx = lax.broadcasted_iota(jnp.int32, (k, lane), 1)
    lo = j_idx * num_classes
    expand = ((l_idx >= lo) & (l_idx < lo + num_classes)).astype(f32)
    w = jnp.dot(w_anchor, expand, preferred_element_type=f32)   # (TR, LANE)

    # Shared exponential: e = exp(-|x|) serves both the numerically stable
    # sigmoid and the stable BCE term log1p(exp(-|x|)).
    e = jnp.exp(-jnp.abs(x))
    inv = 1.0 / (1.0 + e)
    pred_sigmoid = jnp.where(x >= 0, inv, 1.0 - inv)        # == e * inv

    # alpha_weight = t*alpha + (1-t)*(1-alpha)   (exact algebraic fold)
    alpha_weight = (1.0 - alpha) + t * (2.0 * alpha - 1.0)
    # pt = t*(1-p) + (1-t)*p                     (exact algebraic fold)
    pt = t + pred_sigmoid - 2.0 * t * pred_sigmoid
    focal_weight = alpha_weight * _static_pow(pt, gamma)

    # max(x, 0) - x*z + log1p(exp(-|x|))
    bce = jnp.maximum(x, 0.0) - x * t + jnp.log1p(e)

    o_ref[...] = (focal_weight * bce * w).astype(o_ref.dtype)


def sigmoid_focal_classification_loss(logits, target, weights, *,
                                      gamma: float = 2.0,
                                      alpha: float = 0.25,
                                      row_tile: int = 512):
    """Pallas TPU implementation of SigmoidFocalClassificationLoss.forward.

    Args:
      logits:  (B, A, C) float — predicted logits.
      target:  (B, A, C) float — one-hot encoded targets.
      weights: (B, A) or (B, A, 1) float — anchor-wise weights.
    Returns:
      (B, A, C) tensor (logits dtype) — weighted focal loss, no reduction.
    """
    B, A, C = logits.shape
    assert target.shape == (B, A, C)
    if weights.ndim == 3:
        assert weights.shape == (B, A, 1)
        weights = weights[..., 0]
    assert weights.shape == (B, A)

    out_dtype = logits.dtype
    total = B * A * C

    # Lane width: multiple of both 128 (vreg lanes) and C (rows span whole
    # anchors -> the per-anchor weight tiles cleanly), >= 512 for long stores.
    lane = 128 * C // math.gcd(128, C)          # lcm(128, C)
    while lane < 512:
        lane *= 2
    k = lane // C

    x_flat = logits.reshape(-1)
    t_flat = target.reshape(-1)
    w_flat = weights.reshape(-1)

    rem = total % lane
    if rem:
        # Rare ragged tail: pad up to a whole row. Row-level raggedness
        # (rows % tile) needs no padding — Pallas masks the partial block.
        pad = lane - rem
        x_flat = jnp.pad(x_flat, (0, pad))
        t_flat = jnp.pad(t_flat, (0, pad))
        w_flat = jnp.pad(w_flat, (0, pad // C))   # zero weight -> zero output
        rows = (total + pad) // lane
    else:
        rows = total // lane

    x2 = x_flat.reshape(rows, lane)
    t2 = t_flat.reshape(rows, lane)
    w2 = w_flat.reshape(rows, k)

    # Row-tile selection: ~1 MiB blocks saturate HBM; an even, balanced grid
    # keeps both v7x TensorCores busy; sublane granularity follows the
    # narrowest dtype so bf16/int8 inputs still tile legally.
    itemsizes = [x2.dtype.itemsize, t2.dtype.itemsize, w2.dtype.itemsize,
                 jnp.dtype(out_dtype).itemsize]
    sub = 32 // min(itemsizes)                  # 8 (f32) / 16 (bf16) / 32 (i8)
    max_tr = max(sub, (row_tile // sub) * sub)
    if rows < 2 * sub:
        nsteps = 1                              # too small to split
    elif rows <= max_tr:
        nsteps = 2                              # split so both v7x TCs work
    else:
        nsteps = 2 * pl.cdiv(rows, 2 * max_tr)  # even, balanced grid
    tr = min(rows, _round_up(pl.cdiv(rows, nsteps), sub))
    grid = (pl.cdiv(rows, tr),)

    io_bytes = (x2.size * x2.dtype.itemsize + t2.size * t2.dtype.itemsize +
                w2.size * w2.dtype.itemsize +
                rows * lane * jnp.dtype(out_dtype).itemsize)
    cost = pl.CostEstimate(flops=25 * rows * lane,
                           transcendentals=2 * rows * lane,
                           bytes_accessed=io_bytes)

    kernel = functools.partial(_focal_loss_kernel, gamma=float(gamma),
                               alpha=float(alpha), num_classes=C)

    out2 = pl.pallas_call(
        kernel,
        out_shape=jax.ShapeDtypeStruct((rows, lane), out_dtype),
        grid_spec=pltpu.PrefetchScalarGridSpec(
            num_scalar_prefetch=0,
            grid=grid,
            in_specs=[
                pl.BlockSpec((tr, lane), lambda i: (i, 0)),
                pl.BlockSpec((tr, lane), lambda i: (i, 0)),
                pl.BlockSpec((tr, k), lambda i: (i, 0)),
            ],
            out_specs=pl.BlockSpec((tr, lane), lambda i: (i, 0)),
        ),
        compiler_params=pltpu.CompilerParams(
            dimension_semantics=("parallel",),
            # ~1 MiB blocks x 4 arrays x 2 buffers + elementwise temporaries
            # comfortably fit 32 MiB on every generation (v7x physical 64 MiB).
            vmem_limit_bytes=32 * 1024 * 1024,
        ),
        cost_estimate=cost,
    )(x2, t2, w2)

    if rem:
        out = out2.reshape(-1)[:total].reshape(B, A, C)
    else:
        out = out2.reshape(B, A, C)
    return out


def _reference(logits, target, weights, gamma=2.0, alpha=0.25):
    pred_sigmoid = jax.nn.sigmoid(logits)
    alpha_weight = target * alpha + (1 - target) * (1 - alpha)
    pt = target * (1.0 - pred_sigmoid) + (1.0 - target) * pred_sigmoid
    focal_weight = alpha_weight * jnp.power(pt, gamma)
    bce = jnp.maximum(logits, 0.0) - logits * target + jnp.log1p(
        jnp.exp(-jnp.abs(logits)))
    return focal_weight * bce * weights[..., None]


if __name__ == "__main__":
    key = jax.random.PRNGKey(0)
    B, A, C = 2, 256, 8  # batch, #anchors, #classes

    k1, k2, k3 = jax.random.split(key, 3)
    logits = jax.random.normal(k1, (B, A, C), dtype=jnp.float32) * 3.0
    cls = jax.random.randint(k2, (B, A), 0, C)
    target = jax.nn.one_hot(cls, C, dtype=jnp.float32)
    weights = jax.random.uniform(k3, (B, A), dtype=jnp.float32)

    out = sigmoid_focal_classification_loss(logits, target, weights)
    out = jax.block_until_ready(out)

    ref = _reference(logits, target, weights)
    assert out.shape == (B, A, C)
    assert jnp.allclose(out, ref, atol=1e-5, rtol=1e-5), \
        f"max abs err {jnp.max(jnp.abs(out - ref))}"

    print("KERNEL_OK")
</pallas_src>

<mosaic_0001>
module attributes {stable_mosaic.version = 11 : i64} {
  func.func @_focal_loss_kernel(%arg0: i32, %arg1: memref<8x512xf32, #tpu.memory_space<vmem>>, %arg2: memref<8x512xf32, #tpu.memory_space<vmem>>, %arg3: memref<8x64xf32, #tpu.memory_space<vmem>>, %arg4: memref<8x512xf32, #tpu.memory_space<vmem>>) attributes {dimension_semantics = [#tpu.dimension_semantics<parallel>], iteration_bounds = array<i64: 1>, scalar_prefetch = 0 : i64, scratch_operands = 0 : i64, tpu.core_type = #tpu.core_type<tc>, window_params = [{transform_indices = @transform_0, window_bounds = array<i64: 8, 512>}, {transform_indices = @transform_1, window_bounds = array<i64: 8, 512>}, {transform_indices = @transform_2, window_bounds = array<i64: 8, 64>}, {transform_indices = @transform_3, window_bounds = array<i64: 8, 512>}]} {
    %c0 = arith.constant 0 : index
    %c0_0 = arith.constant 0 : index
    %0 = vector.load %arg1[%c0, %c0_0] : memref<8x512xf32, #tpu.memory_space<vmem>>, vector<8x512xf32>
    %c0_1 = arith.constant 0 : index
    %c0_2 = arith.constant 0 : index
    %1 = vector.load %arg2[%c0_1, %c0_2] : memref<8x512xf32, #tpu.memory_space<vmem>>, vector<8x512xf32>
    %c0_3 = arith.constant 0 : index
    %c0_4 = arith.constant 0 : index
    %2 = vector.load %arg3[%c0_3, %c0_4] : memref<8x64xf32, #tpu.memory_space<vmem>>, vector<8x64xf32>
    %3 = tpu.iota {dimensions = array<i32: 0>} : vector<64x512xi32>
    %4 = tpu.iota {dimensions = array<i32: 1>} : vector<64x512xi32>
    %c8_i32 = arith.constant 8 : i32
    %5 = vector.broadcast %c8_i32 : i32 to vector<64x512xi32>
    %6 = arith.muli %3, %5 : vector<64x512xi32>
    %7 = arith.cmpi sge, %4, %6 : vector<64x512xi32>
    %c8_i32_5 = arith.constant 8 : i32
    %8 = vector.broadcast %c8_i32_5 : i32 to vector<64x512xi32>
    %9 = arith.addi %6, %8 : vector<64x512xi32>
    %10 = arith.cmpi slt, %4, %9 : vector<64x512xi32>
    %11 = arith.andi %7, %10 : vector<64x512xi1>
    %12 = arith.extui %11 : vector<64x512xi1> to vector<64x512xi32>
    %13 = arith.sitofp %12 : vector<64x512xi32> to vector<64x512xf32>
    %cst = arith.constant dense<0.000000e+00> : vector<8x512xf32>
    %14 = tpu.matmul %2, %13, %cst {dimension_numbers = #tpu.dot_dimension_numbers<[1], [0], [0], [1], [0, 0, 1, 1], [], []>} : vector<8x64xf32>, vector<64x512xf32>, vector<8x512xf32> -> vector<8x512xf32>
    %15 = math.absf %0 : vector<8x512xf32>
    %cst_6 = arith.constant 0.000000e+00 : f32
    %16 = vector.broadcast %cst_6 : f32 to vector<8x512xf32>
    %17 = arith.subf %16, %15 : vector<8x512xf32>
    %18 = math.exp %17 : vector<8x512xf32>
    %cst_7 = arith.constant 1.000000e+00 : f32
    %19 = vector.broadcast %cst_7 : f32 to vector<8x512xf32>
    %20 = arith.addf %19, %18 : vector<8x512xf32>
    %cst_8 = arith.constant 1.000000e+00 : f32
    %21 = vector.broadcast %cst_8 : f32 to vector<8x512xf32>
    %22 = arith.divf %21, %20 : vector<8x512xf32>
    %cst_9 = arith.constant 0.000000e+00 : f32
    %23 = vector.broadcast %cst_9 : f32 to vector<8x512xf32>
    %24 = arith.cmpf oge, %0, %23 : vector<8x512xf32>
    %cst_10 = arith.constant 1.000000e+00 : f32
    %25 = vector.broadcast %cst_10 : f32 to vector<8x512xf32>
    %26 = arith.subf %25, %22 : vector<8x512xf32>
    %27 = arith.select %24, %22, %26 : vector<8x512xi1>, vector<8x512xf32>
    %cst_11 = arith.constant -5.000000e-01 : f32
    %28 = vector.broadcast %cst_11 : f32 to vector<8x512xf32>
    %29 = arith.mulf %1, %28 : vector<8x512xf32>
    %cst_12 = arith.constant 7.500000e-01 : f32
    %30 = vector.broadcast %cst_12 : f32 to vector<8x512xf32>
    %31 = arith.addf %30, %29 : vector<8x512xf32>
    %32 = arith.addf %1, %27 : vector<8x512xf32>
    %cst_13 = arith.constant 2.000000e+00 : f32
    %33 = vector.broadcast %cst_13 : f32 to vector<8x512xf32>
    %34 = arith.mulf %33, %1 : vector<8x512xf32>
    %35 = arith.mulf %34, %27 : vector<8x512xf32>
    %36 = arith.subf %32, %35 : vector<8x512xf32>
    %37 = arith.mulf %36, %36 : vector<8x512xf32>
    %38 = arith.mulf %31, %37 : vector<8x512xf32>
    %cst_14 = arith.constant 0.000000e+00 : f32
    %39 = vector.broadcast %cst_14 : f32 to vector<8x512xf32>
    %40 = arith.maximumf %0, %39 : vector<8x512xf32>
    %41 = arith.mulf %0, %1 : vector<8x512xf32>
    %42 = arith.subf %40, %41 : vector<8x512xf32>
    %43 = math.log1p %18 : vector<8x512xf32>
    %44 = arith.addf %42, %43 : vector<8x512xf32>
    %45 = arith.mulf %38, %44 : vector<8x512xf32>
    %46 = arith.mulf %45, %14 : vector<8x512xf32>
    %c0_15 = arith.constant 0 : index
    %c0_16 = arith.constant 0 : index
    %47 = vector.load %arg4[%c0_15, %c0_16] : memref<8x512xf32, #tpu.memory_space<vmem>>, vector<8x512xf32>
    tpu.vector_store %arg4[%c0_15, %c0_16], %46 {strides = array<i32>} : memref<8x512xf32, #tpu.memory_space<vmem>>, vector<8x512xf32>,
    return
  }
  func.func @transform_0(%arg0: i32) -> (i32, i32) {
    %c0_i32 = arith.constant 0 : i32
    %c0_i32_0 = arith.constant 0 : i32
    return %arg0, %c0_i32 : i32, i32
  }
  func.func @transform_1(%arg0: i32) -> (i32, i32) {
    %c0_i32 = arith.constant 0 : i32
    %c0_i32_0 = arith.constant 0 : i32
    return %arg0, %c0_i32 : i32, i32
  }
  func.func @transform_2(%arg0: i32) -> (i32, i32) {
    %c0_i32 = arith.constant 0 : i32
    %c0_i32_0 = arith.constant 0 : i32
    return %arg0, %c0_i32 : i32, i32
  }
  func.func @transform_3(%arg0: i32) -> (i32, i32) {
    %c0_i32 = arith.constant 0 : i32
    %c0_i32_0 = arith.constant 0 : i32
    return %arg0, %c0_i32 : i32, i32
  }
}

</mosaic_0001>

<bundles_post_ra>
// kernel: tpu_custom_call.1
= control target key start
LH: loop header
LB: loop body
LE: loop exit
PB: predicated region body
PF: predicated region fallthrough
CT: control target
= control target key end

     0   :  { %8 = vsyncpa [#allocation3], 0  ;;  %s1023_s0 = inlined_call_operand.hbm [shape: f32[8,512], index: 0, kind: input, shape index: {}]   ;;  %s1024_s1 = inlined_call_operand.hbm [shape: f32[8,512], index: 1, kind: input, shape index: {}]   ;;  %s1025_s2 = inlined_call_operand.hbm [shape: f32[8,64], index: 2, kind: input, shape index: {}]   ;;  %s1026_s3 = inlined_call_operand.hbm [shape: f32[8,512], index: 3, kind: output, shape index: {}]  }
   0x1   :  { %9 = vsyncpa [#allocation6], 0 }
   0x2   :  { %10 = vsyncpa [#allocation4], 0  ;;  %s769_s12 = smov [#allocation5]   ;;  %s770_s14 = smov [#allocation2]  }
   0x3   :  { %s27_s13 = sshll.u32 %s769_s12, 4  ;;  %s17_s15 = sshll.u32 %s770_s14, 4  ;;  %s28_s13 = int_to_ptr.vmem [resolvable:$true] %s27_s13  ;;  %s18_s15 = int_to_ptr.vmem [resolvable:$true] %s17_s15 }
   0x4   :  { %s675_s18 = scalar_lea.hbm %s1024_s1, 512 }
   0x5   :  { %p676_p0 = scmp.ne.s32.totalorder %s1024_s1, %s675_s18  ;;  %p679_p1 = scmp.lt.u32.totalorder %s675_s18, %s1024_s1 }
   0x7   :  { %p681_p2 = pnand %p679_p1, %p676_p0 }
   0x9   :  { %684 = shalt.err (!%p681_p2)
}
   0xa   :  { %s685_s23 = scalar_lea.vmem %s28_s13, 512  ;;  %p690_p4 = scmp.lt.s32.totalorder %s28_s13, %s28_s13 }
   0xb   :  { %p686_p3 = scmp.ne.s32.totalorder %s28_s13, %s685_s23  ;;  %p691_p5 = scmp.lt.s32.totalorder %s685_s23, %s685_s23 }
   0xd   :  { %p692_p6 = por %p691_p5, %p690_p4 }
   0xf   :  { %p693_p7 = pnand %p692_p6, %p686_p3 }
  0x11   :  { %696 = shalt.err (!%p693_p7)
}
  0x12   :  { %30 = dma.hbm_to_vmem [thread:$0]  %s1024_s1, 512, %s28_s13, [#allocation6]  }
  0x13   :  { %s697_s28 = scalar_lea.hbm %s1023_s0, 512 }
  0x14   :  { %p698_p8 = scmp.ne.s32.totalorder %s1023_s0, %s697_s28  ;;  %p701_p9 = scmp.lt.u32.totalorder %s697_s28, %s1023_s0 }
  0x16   :  { %p703_p10 = pnand %p701_p9, %p698_p8 }
  0x18   :  { %706 = shalt.err (!%p703_p10)
}
  0x19   :  { %s707_s6 = scalar_lea.vmem %s18_s15, 512  ;;  %p712_p12 = scmp.lt.s32.totalorder %s18_s15, %s18_s15 }
  0x1a   :  { %p708_p11 = scmp.ne.s32.totalorder %s18_s15, %s707_s6  ;;  %p713_p13 = scmp.lt.s32.totalorder %s707_s6, %s707_s6 }
  0x1c   :  { %p714_p0 = por %p713_p13, %p712_p12 }
  0x1e   :  { %p715_p1 = pnand %p714_p0, %p708_p11 }
  0x20   :  { %718 = shalt.err (!%p715_p1)
}
  0x21   :  { %20 = dma.hbm_to_vmem [thread:$0]  %s1023_s0, 512, %s18_s15, [#allocation3]  }
  0x22   :  { %s771_s8 = smov [#allocation7]   ;;  %s719_s12 = scalar_lea.hbm %s1025_s2, 128 }
  0x23   :  { %s37_s9 = sshll.u32 %s771_s8, 4  ;;  %p720_p2 = scmp.ne.s32.totalorder %s1025_s2, %s719_s12  ;;  %s38_s9 = int_to_ptr.vmem [resolvable:$true] %s37_s9 }
  0x24   :  { %p723_p3 = scmp.lt.u32.totalorder %s719_s12, %s1025_s2 }
  0x26   :  { %p725_p4 = pnand %p723_p3, %p720_p2 }
  0x28   :  { %728 = shalt.err (!%p725_p4)
}
  0x29   :  { %s729_s18 = scalar_lea.vmem %s38_s9, 128  ;;  %p734_p6 = scmp.lt.s32.totalorder %s38_s9, %s38_s9 }
  0x2a   :  { %p730_p5 = scmp.ne.s32.totalorder %s38_s9, %s729_s18  ;;  %p735_p7 = scmp.lt.s32.totalorder %s729_s18, %s729_s18 }
  0x2c   :  { %p736_p8 = por %p735_p7, %p734_p6 }
  0x2e   :  { %p737_p9 = pnand %p736_p8, %p730_p5 }
  0x30   :  { %740 = shalt.err (!%p737_p9)
}
  0x31   :  { %40 = dma.hbm_to_vmem [thread:$0]  %s1025_s2, 128, %s38_s9, [#allocation6]  }
  0x32   :  { %763 = dma.done.wait [#allocation3], 512  }
  0x33   :  { %764 = vsyncadd [#allocation3], 4294966784  ;;  %v59_v0 = vlaneseq }
  0x34   :  { %765 = dma.done.wait [#allocation6], 640  }
  0x35   :  { %766 = vsyncadd [#allocation6], 4294966656  ;;  %v772_v1 = vmov 0.0   ;;  %v831_v2 = vshrl.u32 %v59_v0, 7  ;;  %v833_v3 = vand.u32 127, %v59_v0  ;;  %v58_v32 = vld [vmem:[#allocation7] sm:$0xff] }
  0x36   :  { %317 = vmatprep.mubr.f32.mxu0 %v772_v1  ;;  %388 = vmatprep.mubr.f32.mxu1 %v772_v1  ;;  %v773_v17 = vmov 1.0|1.0   ;;  %v945_v33 = vld [vmem:[#allocation2] sm:$0xff]  ;;  %v948_v35 = vld [vmem:[#allocation2 + $0x10] sm:$0xff]  ;;  %v951_v38 = vld [vmem:[#allocation2 + $0x8] sm:$0xff]  ;;  %s774_s2 = smov [#allocation8]  }
  0x37   :  { %v61_v4 = vadd.s32 8, %v831_v2  ;;  %v837_v5 = vadd.s32 128, %v833_v3  ;;  %v73_v6 = vmul.u32 8, %v831_v2  ;;  %v841_v7 = vadd.s32 384, %v833_v3  ;;  %v954_v42 = vld [vmem:[#allocation2 + $0x18] sm:$0xff]  ;;  %v54_v59 = vld [vmem:[#allocation5] sm:$0xff] }
  0x38   :  { %v62_v10 = vadd.s32 16, %v831_v2  ;;  %v63_v11 = vadd.s32 24, %v831_v2  ;;  %v858_v15 = vadd.s32 256, %v833_v3  ;;  %v64_v20 = vadd.s32 32, %v831_v2  ;;  %v56_v62 = vld [vmem:[#allocation5 + $0x10] sm:$0xff]  ;;  %s537_s19 = sshll.u32 %s774_s2, 4  ;;  %s538_s19 = int_to_ptr.vmem [resolvable:$true] %s537_s19 }
  0x39   :  { %v74_v8 = vmul.u32 8, %v61_v4  ;;  %vm82_vm0 = vcmp.ge.s32.totalorder %v837_v5, %v73_v6  ;;  %v113_v9 = vadd.s32 8, %v73_v6  ;;  %vm84_vm1 = vcmp.ge.s32.totalorder %v841_v7, %v73_v6  ;;  %s741_s20 = scalar_lea.vmem %s538_s19, 512  ;;  %p746_p11 = scmp.lt.s32.totalorder %s538_s19, %s538_s19 }
  0x3a   :  { %v75_v14 = vmul.u32 8, %v62_v10  ;;  %v860_v16 = vmul.u32 8, %v63_v11  ;;  %vm81_vm12 = vcmp.ge.s32.totalorder %v833_v3, %v73_v6  ;;  %v65_v21 = vadd.s32 40, %v831_v2  ;;  %p742_p10 = scmp.ne.s32.totalorder %s538_s19, %s741_s20  ;;  %p747_p12 = scmp.lt.s32.totalorder %s741_s20, %s741_s20 }
  0x3b   :  { %vm86_vm2 = vcmp.ge.s32.totalorder %v837_v5, %v74_v8  ;;  %v114_v12 = vadd.s32 8, %v74_v8  ;;  %vm122_vm3 = vcmp.lt.s32.totalorder %v837_v5, %v113_v9  ;;  %vm124_vm5 = vcmp.lt.s32.totalorder %v841_v7, %v113_v9 }
  0x3c   :  { %vm154_vm4 = vmand %vm82_vm0, %vm122_vm3  ;;  %vm88_vm7 = vcmp.ge.s32.totalorder %v841_v7, %v74_v8  ;;  %vm121_vm13 = vcmp.lt.s32.totalorder %v833_v3, %v113_v9  ;;  %vm85_vm15 = vcmp.ge.s32.totalorder %v833_v3, %v74_v8  ;;  %v115_v18 = vadd.s32 8, %v75_v14  ;;  %p748_p13 = por %p747_p12, %p746_p11 }
  0x3d   :  { %vm126_vm6 = vcmp.lt.s32.totalorder %v837_v5, %v114_v12  ;;  %vm128_vm8 = vcmp.lt.s32.totalorder %v841_v7, %v114_v12  ;;  %vm853_vm9 = vmand %vm84_vm1, %vm124_vm5  ;;  %vm125_vm0 = vcmp.lt.s32.totalorder %v833_v3, %v114_v12  ;;  %vm83_vm3 = vcmp.ge.s32.totalorder %v858_v15, %v73_v6 }
  0x3e   :  { %vm158_vm10 = vmand %vm86_vm2, %vm126_vm6  ;;  %v116_v19 = vadd.s32 8, %v860_v16  ;;  %vm87_vm6 = vcmp.ge.s32.totalorder %v858_v15, %v74_v8  ;;  %v77_v22 = vmul.u32 8, %v64_v20  ;;  %v78_v23 = vmul.u32 8, %v65_v21  ;;  %v55_v8 = vld [vmem:[#allocation5 + $0x8] sm:$0xff]  ;;  %v57_v20 = vld [vmem:[#allocation5 + $0x18] sm:$0xff]  ;;  %p749_p0 = pnand %p748_p13, %p742_p10 }
  0x3f   :  { %vm613_vm11 = vmpackc.low %vm158_vm10, %vm154_vm4  ;;  %vm123_vm4 = vcmp.lt.s32.totalorder %v858_v15, %v113_v9  ;;  %v66_v26 = vadd.s32 48, %v831_v2  ;;  %v67_v27 = vadd.s32 56, %v831_v2  ;;  %v395_v34 = vand.u32 2147483647, %v945_v33 }
  0x40   :  { %614 = vmatprep.subr.msk.bf16.mxu0 %vm613_vm11, %v773_v17  ;;  %vm160_vm14 = vmand %vm88_vm7, %vm128_vm8  ;;  %vm127_vm7 = vcmp.lt.s32.totalorder %v858_v15, %v114_v12  ;;  %vm130_vm11 = vcmp.lt.s32.totalorder %v837_v5, %v115_v18  ;;  %v117_v24 = vadd.s32 8, %v77_v22  ;;  %v118_v25 = vadd.s32 8, %v78_v23 }
  0x41   :  { %vm629_vm1 = vmpackc.low %vm160_vm14, %vm853_vm9  ;;  %vm90_vm9 = vcmp.ge.s32.totalorder %v837_v5, %v75_v14  ;;  %vm134_vm14 = vcmp.lt.s32.totalorder %v837_v5, %v116_v19  ;;  %v79_v28 = vmul.u32 8, %v66_v26  ;;  %v80_v29 = vmul.u32 8, %v67_v27 }
  0x42   :  { %630 = vmatprep.subr.msk.bf16.mxu1 %vm629_vm1, %v773_v17  ;;  %vm153_vm2 = vmand %vm81_vm12, %vm121_vm13  ;;  %vm94_vm13 = vcmp.ge.s32.totalorder %v837_v5, %v860_v16  ;;  %vm92_vm1 = vcmp.ge.s32.totalorder %v841_v7, %v75_v14  ;;  %v397_v36 = vand.u32 2147483647, %v948_v35  ;;  %v399_v37 = vsub.f32 0.0, %v395_v34 }
  0x43   :  { %vm157_vm5 = vmand %vm85_vm15, %vm125_vm0  ;;  %v119_v30 = vadd.s32 8, %v79_v28  ;;  %v120_v31 = vadd.s32 8, %v80_v29  ;;  %v396_v41 = vand.u32 2147483647, %v951_v38  ;;  %v398_v44 = vand.u32 2147483647, %v954_v42 }
  0x44   :  { %vm615_vm8 = vmpackc.low %vm157_vm5, %vm153_vm2  ;;  %vm132_vm2 = vcmp.lt.s32.totalorder %v841_v7, %v115_v18  ;;  %vm136_vm5 = vcmp.lt.s32.totalorder %v841_v7, %v116_v19  ;;  %v401_v39 = vsub.f32 0.0, %v397_v36  ;;  %v403_v40 = vmul.f32 1.442695, %v399_v37 }
  0x45   :  { %616 = vmatpush1.bf16.msk.msra.mxu0 %vm615_vm8, %v773_v17  ;;  %vm155_vm10 = vmand %vm83_vm3, %vm123_vm4  ;;  %vm96_vm4 = vcmp.ge.s32.totalorder %v841_v7, %v860_v16  ;;  %vm89_vm8 = vcmp.ge.s32.totalorder %v833_v3, %v75_v14  ;;  %v400_v45 = vsub.f32 0.0, %v396_v41  ;;  %v402_v46 = vsub.f32 0.0, %v398_v44 }
  0x46   :  { %vm159_vm12 = vmand %vm87_vm6, %vm127_vm7  ;;  %v407_v43 = vmul.f32 1.442695, %v401_v39  ;;  %651 = vpow2.f32 %v403_v40  ;;  %v447_v61 = vmul.f32 2.0, %v54_v59  ;;  %v435_v13 = vmul.f32 -0.5, %v54_v59 }
  0x47   :  { %vm631_vm15 = vmpackc.low %vm159_vm12, %vm155_vm10  ;;  %vm129_vm10 = vcmp.lt.s32.totalorder %v833_v3, %v115_v18  ;;  %vm133_vm12 = vcmp.lt.s32.totalorder %v833_v3, %v116_v19  ;;  %v405_v47 = vmul.f32 1.442695, %v400_v45  ;;  %v409_v48 = vmul.f32 1.442695, %v402_v46 }
  0x48   :  { %632 = vmatpush1.bf16.msk.msra.mxu1 %vm631_vm15, %v773_v17  ;;  %vm162_vm0 = vmand %vm90_vm9, %vm130_vm11  ;;  %vm93_vm11 = vcmp.ge.s32.totalorder %v833_v3, %v860_v16  ;;  %vm91_vm15 = vcmp.ge.s32.totalorder %v858_v15, %v75_v14  ;;  %653 = vpow2.f32 %v407_v43  ;;  %v469_v45 = vmax.f32 %v948_v35, 0.0 }
  0x49   :  { %vm166_vm3 = vmand %vm94_vm13, %vm134_vm14  ;;  %655 = vpow2.f32 %v405_v47  ;;  %v436_v47 = vmul.f32 -0.5, %v55_v8 }
  0x4a   :  { %vm617_vm6 = vmpackc.low %vm166_vm3, %vm162_vm0  ;;  %vm131_vm0 = vcmp.lt.s32.totalorder %v858_v15, %v115_v18  ;;  %vm135_vm3 = vcmp.lt.s32.totalorder %v858_v15, %v116_v19  ;;  %657 = vpow2.f32 %v409_v48  ;;  %v467_v18 = vmax.f32 %v945_v33, 0.0 }
  0x4b   :  { %618 = vmatprep.subr.msk.bf16.mxu0 %vm617_vm6, %v773_v17  ;;  %vm164_vm7 = vmand %vm92_vm1, %vm132_vm2  ;;  %vm95_vm2 = vcmp.ge.s32.totalorder %v858_v15, %v860_v16  ;;  %vm98_vm6 = vcmp.ge.s32.totalorder %v837_v5, %v77_v22  ;;  %v448_v19 = vmul.f32 2.0, %v55_v8 }
  0x4c   :  { %vm168_vm9 = vmand %vm96_vm4, %vm136_vm5 }
  0x4d   :  { %vm633_vm13 = vmpackc.low %vm168_vm9, %vm164_vm7  ;;  %vm138_vm7 = vcmp.lt.s32.totalorder %v837_v5, %v117_v24  ;;  %vm142_vm9 = vcmp.lt.s32.totalorder %v837_v5, %v118_v25 }
  0x4e   :  { %634 = vmatprep.subr.msk.bf16.mxu1 %vm633_vm13, %v773_v17  ;;  %vm161_vm14 = vmand %vm89_vm8, %vm129_vm10  ;;  %vm102_vm10 = vcmp.ge.s32.totalorder %v837_v5, %v78_v23  ;;  %vm100_vm13 = vcmp.ge.s32.totalorder %v841_v7, %v77_v22 }
  0x4f   :  { %vm165_vm1 = vmand %vm93_vm11, %vm133_vm12 }
  0x50   :  { %vm619_vm4 = vmpackc.low %vm165_vm1, %vm161_vm14  ;;  %vm140_vm14 = vcmp.lt.s32.totalorder %v841_v7, %v117_v24  ;;  %vm144_vm1 = vcmp.lt.s32.totalorder %v841_v7, %v118_v25  ;;  %v652_v49 = vpop.eup %651 }
  0x51   :  { %620 = vmatpush1.bf16.msk.msra.mxu0 %vm619_vm4, %v773_v17  ;;  %vm163_vm5 = vmand %vm91_vm15, %vm131_vm0  ;;  %vm104_vm0 = vcmp.ge.s32.totalorder %v841_v7, %v78_v23  ;;  %vm97_vm4 = vcmp.ge.s32.totalorder %v833_v3, %v77_v22  ;;  %v411_v51 = vadd.f32 1.0, %v652_v49  ;;  %v482_v2 = vmul.f32 -0.5, %v652_v49 }
  0x52   :  { %vm167_vm8 = vmand %vm95_vm2, %vm135_vm3  ;;  %v957_v50 = vpop.eup %653  ;;  %v485_v14 = vand.u32 2147483647, %v652_v49 }
  0x53   :  { %vm635_vm11 = vmpackc.low %vm167_vm8, %vm163_vm5  ;;  %vm137_vm5 = vcmp.lt.s32.totalorder %v833_v3, %v117_v24  ;;  %vm141_vm8 = vcmp.lt.s32.totalorder %v833_v3, %v118_v25  ;;  %v413_v52 = vadd.f32 1.0, %v957_v50  ;;  %659 = vrcp.f32 %v411_v51  ;;  %v960_v53 = vpop.eup %655 }
  0x54   :  { %636 = vmatpush1.bf16.msk.msra.mxu1 %vm635_vm11, %v773_v17  ;;  %vm170_vm12 = vmand %vm98_vm6, %vm138_vm7  ;;  %vm101_vm7 = vcmp.ge.s32.totalorder %v833_v3, %v78_v23  ;;  %vm99_vm11 = vcmp.ge.s32.totalorder %v858_v15, %v77_v22  ;;  %v962_v54 = vpop.eup %657  ;;  %v412_v55 = vadd.f32 1.0, %v960_v53  ;;  %v483_v10 = vadd.f32 1.0, %v482_v2 }
  0x55   :  { %vm174_vm15 = vmand %vm102_vm10, %vm142_vm9  ;;  %661 = vrcp.f32 %v413_v52  ;;  %v414_v56 = vadd.f32 1.0, %v962_v54  ;;  %v500_v11 = vmul.f32 -0.5, %v957_v50  ;;  %v471_v22 = vmul.f32 %v54_v59, %v945_v33 }
  0x56   :  { %vm621_vm2 = vmpackc.low %vm174_vm15, %vm170_vm12  ;;  %vm139_vm12 = vcmp.lt.s32.totalorder %v858_v15, %v117_v24  ;;  %vm143_vm15 = vcmp.lt.s32.totalorder %v858_v15, %v118_v25  ;;  %663 = vrcp.f32 %v412_v55  ;;  %v491_v24 = vmul.f32 -0.5, %v960_v53 }
  0x57   :  { %622 = vmatprep.subr.msk.bf16.mxu0 %vm621_vm2, %v773_v17  ;;  %vm172_vm3 = vmand %vm100_vm13, %vm140_vm14  ;;  %vm103_vm14 = vcmp.ge.s32.totalorder %v858_v15, %v78_v23  ;;  %vm106_vm2 = vcmp.ge.s32.totalorder %v837_v5, %v79_v28  ;;  %665 = vrcp.f32 %v414_v56  ;;  %v484_v26 = vmul.f32 %v652_v49, %v483_v10 }
  0x58   :  { %vm176_vm6 = vmand %vm104_vm0, %vm144_vm1  ;;  %667 = vlog2.f32 %v411_v51  ;;  %v501_v27 = vadd.f32 1.0, %v500_v11  ;;  %v475_v40 = vsub.f32 %v467_v18, %v471_v22  ;;  %v492_v43 = vadd.f32 1.0, %v491_v24 }
  0x59   :  { %vm637_vm10 = vmpackc.low %vm176_vm6, %vm172_vm3  ;;  %vm146_vm3 = vcmp.lt.s32.totalorder %v837_v5, %v119_v30  ;;  %669 = vlog2.f32 %v413_v52  ;;  %v503_v46 = vand.u32 2147483647, %v957_v50  ;;  %v494_v48 = vand.u32 2147483647, %v960_v53 }
  0x5a   :  { %638 = vmatprep.subr.msk.bf16.mxu1 %vm637_vm10, %v773_v17  ;;  %vm169_vm9 = vmand %vm97_vm4, %vm137_vm5  ;;  %vm110_vm4 = vcmp.ge.s32.totalorder %v837_v5, %v80_v29  ;;  %vm150_vm5 = vcmp.lt.s32.totalorder %v837_v5, %v120_v31  ;;  %671 = vlog2.f32 %v412_v55  ;;  %v473_v51 = vmul.f32 %v56_v62, %v948_v35 }
  0x5b   :  { %vm173_vm13 = vmand %vm101_vm7, %vm141_vm8  ;;  %vm108_vm8 = vcmp.ge.s32.totalorder %v841_v7, %v79_v28  ;;  %673 = vlog2.f32 %v414_v56  ;;  %v502_v2 = vmul.f32 %v957_v50, %v501_v27 }
  0x5c   :  { %vm623_vm0 = vmpackc.low %vm173_vm13, %vm169_vm9  ;;  %vm148_vm9 = vcmp.lt.s32.totalorder %v841_v7, %v119_v30 }
  0x5d   :  { %624 = vmatpush1.bf16.msk.msra.mxu0 %vm623_vm0, %v773_v17  ;;  %vm171_vm1 = vmand %vm99_vm11, %vm139_vm12  ;;  %vm112_vm11 = vcmp.ge.s32.totalorder %v841_v7, %v80_v29  ;;  %vm152_vm12 = vcmp.lt.s32.totalorder %v841_v7, %v120_v31  ;;  %v660_v57 = vpop.eup %659 }
  0x5e   :  { %vm175_vm6 = vmand %vm103_vm14, %vm143_vm15  ;;  %vm105_vm15 = vcmp.ge.s32.totalorder %v833_v3, %v79_v28  ;;  %v427_v60 = vsub.f32 1.0, %v660_v57 }
  0x5f   :  { %vm639_vm10 = vmpackc.low %vm175_vm6, %vm171_vm1  ;;  %vm145_vm1 = vcmp.lt.s32.totalorder %v833_v3, %v119_v30  ;;  %v662_v58 = vpop.eup %661 }
  0x60   :  { %640 = vmatpush1.bf16.msk.msra.mxu1 %vm639_vm10, %v773_v17  ;;  %vm178_vm7 = vmand %vm106_vm2, %vm146_vm3  ;;  %vm109_vm2 = vcmp.ge.s32.totalorder %v833_v3, %v80_v29  ;;  %vm149_vm3 = vcmp.lt.s32.totalorder %v833_v3, %v120_v31  ;;  %v429_v63 = vsub.f32 1.0, %v662_v58  ;;  %v664_v1 = vpop.eup %663  ;;  %v449_v3 = vmul.f32 2.0, %v56_v62 }
  0x61   :  { %vm182_vm13 = vmand %vm110_vm4, %vm150_vm5  ;;  %vm107_vm5 = vcmp.ge.s32.totalorder %v858_v15, %v79_v28  ;;  %v666_v7 = vpop.eup %665  ;;  %v428_v9 = vsub.f32 1.0, %v664_v1  ;;  %v439_v28 = vadd.f32 0.75, %v435_v13 }
  0x62   :  { %vm625_vm0 = vmpackc.low %vm182_vm13, %vm178_vm7  ;;  %vm147_vm7 = vcmp.lt.s32.totalorder %v858_v15, %v119_v30  ;;  %v668_v12 = vpop.eup %667  ;;  %v430_v21 = vsub.f32 1.0, %v666_v7  ;;  %v437_v30 = vmul.f32 -0.5, %v56_v62 }
  0x63   :  { %626 = vmatprep.subr.msk.bf16.mxu0 %vm625_vm0, %v773_v17  ;;  %vm180_vm14 = vmand %vm108_vm8, %vm148_vm9  ;;  %vm111_vm8 = vcmp.ge.s32.totalorder %v858_v15, %v80_v29  ;;  %vm151_vm9 = vcmp.lt.s32.totalorder %v858_v15, %v120_v31  ;;  %v481_v25 = vmul.f32 0.6931472, %v668_v12  ;;  %v450_v31 = vmul.f32 2.0, %v57_v20  ;;  %v670_v37 = vpop.eup %669 }
  0x64   :  { %vm184_vm6 = vmand %vm112_vm11, %vm152_vm12  ;;  %vm249_vm12 = vcmask 523264   ;;  %v672_v44 = vpop.eup %671 }
  0x65   :  { %vm641_vm10 = vmpackc.low %vm184_vm6, %vm180_vm14  ;;  %v674_v56 = vpop.eup %673 }
  0x66   :  { %642 = vmatprep.subr.msk.bf16.mxu1 %vm641_vm10, %v773_v17  ;;  %vm177_vm4 = vmand %vm105_vm15, %vm145_vm1  ;;  %vm423_vm15 = vcmp.ge.f32.partialorder %v945_v33, 0.0  ;;  %vm425_vm1 = vcmp.ge.f32.partialorder %v948_v35, 0.0  ;;  %vm974_vm10 = vcmp.lt.f32.partialorder %v485_v14, 0.0004427343  ;;  %v509_v33 = vmul.f32 -0.5, %v962_v54 }
  0x67   :  { %vm181_vm13 = vmand %vm109_vm2, %vm149_vm3  ;;  %v431_v0 = vsel %vm423_vm15, %v660_v57, %v427_v60  ;;  %v433_v6 = vsel %vm425_vm1, %v662_v58, %v429_v63  ;;  %vm424_vm2 = vcmp.ge.f32.partialorder %v951_v38, 0.0  ;;  %vm426_vm3 = vcmp.ge.f32.partialorder %v954_v42, 0.0 }
  0x68   :  { %vm627_vm0 = vmpackc.low %vm181_vm13, %vm177_vm4  ;;  %v443_v4 = vadd.f32 %v431_v0, %v54_v59  ;;  %v451_v5 = vmul.f32 %v447_v61, %v431_v0  ;;  %v445_v15 = vadd.f32 %v433_v6, %v56_v62  ;;  %v453_v16 = vmul.f32 %v449_v3, %v433_v6 }
  0x69   :  { %628 = vmatpush1.bf16.msk.msra.mxu0 %vm627_vm0, %v773_v17  ;;  %vm179_vm11 = vmand %vm107_vm5, %vm147_vm7  ;;  %v432_v23 = vsel %vm424_vm2, %v664_v1, %v428_v9  ;;  %v434_v36 = vsel %vm426_vm3, %v666_v7, %v430_v21  ;;  %v487_v49 = vsel %vm974_vm10, %v484_v26, %v481_v25  ;;  %v468_v58 = vmax.f32 %v951_v38, 0.0 }
  0x6a   :  { %vm183_vm6 = vmand %vm111_vm8, %vm151_vm9  ;;  %v452_v34 = vmul.f32 %v448_v19, %v432_v23  ;;  %v457_v41 = vsub.f32 %v445_v15, %v453_v16  ;;  %v446_v52 = vadd.f32 %v434_v36, %v57_v20  ;;  %v454_v55 = vmul.f32 %v450_v31, %v434_v36 }
  0x6b   :  { %vm643_vm14 = vmpackc.low %vm183_vm6, %vm179_vm11  ;;  %v472_v59 = vmul.f32 %v55_v8, %v951_v38  ;;  %v510_v60 = vadd.f32 1.0, %v509_v33  ;;  %v499_v61 = vmul.f32 0.6931472, %v670_v37  ;;  %v490_v63 = vmul.f32 0.6931472, %v672_v44 }
  0x6c   :  { %644 = vmatpush1.bf16.msk.msra.mxu1 %vm643_vm14, %v773_v17  ;;  %595 = vmatmul.mubr.msk.f32.vlgmr.msra.gmra.mrb[0].mxu0 %vm249_vm12, %v58_v32  ;;  %v455_v17 = vsub.f32 %v443_v4, %v451_v5  ;;  %v493_v0 = vmul.f32 %v960_v53, %v492_v43  ;;  %v512_v1 = vand.u32 2147483647, %v962_v54  ;;  %vm990_vm4 = vcmp.lt.f32.partialorder %v503_v46, 0.0004427343 }
  0x6d   :  { %v440_v35 = vadd.f32 0.75, %v436_v47  ;;  %vm994_vm5 = vcmp.lt.f32.partialorder %v494_v48, 0.0004427343  ;;  %v438_v4 = vmul.f32 -0.5, %v57_v20  ;;  %v458_v38 = vsub.f32 %v446_v52, %v454_v55 }
  0x6e   :  { %v459_v39 = vmul.f32 %v455_v17, %v455_v17  ;;  %v470_v5 = vmax.f32 %v954_v42, 0.0  ;;  %v474_v6 = vmul.f32 %v57_v20, %v954_v42  ;;  %v476_v7 = vsub.f32 %v468_v58, %v472_v59 }
  0x6f   :  { %612 = vmatmul.mubr.msk.f32.vlgmr.msra.gmra.mrb[0].mxu1 %vm249_vm12, %v58_v32  ;;  %v444_v32 = vadd.f32 %v432_v23, %v55_v8  ;;  %v508_v8 = vmul.f32 0.6931472, %v674_v56  ;;  %v511_v50 = vmul.f32 %v962_v54, %v510_v60  ;;  %v441_v9 = vadd.f32 0.75, %v437_v30 }
  0x70   :  { %v496_v10 = vsel %vm994_vm5, %v493_v0, %v490_v63  ;;  %vm1003_vm7 = vcmp.lt.f32.partialorder %v512_v1, 0.0004427343  ;;  %v463_v12 = vmul.f32 %v459_v39, %v439_v28  ;;  %v515_v13 = vadd.f32 %v487_v49, %v475_v40 }
  0x71   :  { %v456_v57 = vsub.f32 %v444_v32, %v452_v34  ;;  %v461_v14 = vmul.f32 %v457_v41, %v457_v41  ;;  %v477_v15 = vsub.f32 %v469_v45, %v473_v51  ;;  %v505_v42 = vsel %vm990_vm4, %v502_v2, %v499_v61 }
  0x72   :  { %v442_v16 = vadd.f32 0.75, %v438_v4  ;;  %v462_v17 = vmul.f32 %v458_v38, %v458_v38  ;;  %v478_v18 = vsub.f32 %v470_v5, %v474_v6  ;;  %v516_v54 = vadd.f32 %v496_v10, %v476_v7 }
  0x73   :  { %v460_v53 = vmul.f32 %v456_v57, %v456_v57  ;;  %v514_v20 = vsel %vm1003_vm7, %v511_v50, %v508_v8  ;;  %v465_v21 = vmul.f32 %v461_v14, %v441_v9  ;;  %v517_v22 = vadd.f32 %v505_v42, %v477_v15 }
  0x74   :  { %v519_v23 = vmul.f32 %v515_v13, %v463_v12  ;;  %v466_v24 = vmul.f32 %v462_v17, %v442_v16  ;;  %v518_v25 = vadd.f32 %v514_v20, %v478_v18 }
  0x75   :  { %v464_v19 = vmul.f32 %v460_v53, %v440_v35  ;;  %v521_v28 = vmul.f32 %v517_v22, %v465_v21 }
  0x76   :  { %v522_v31 = vmul.f32 %v518_v25, %v466_v24 }
  0x77   :  { %v520_v26 = vmul.f32 %v516_v54, %v464_v19 }
 0x13f   :  { %v319_v27 = vpop.f32.mrb[0].mxu0 }
 0x140   :  { %v523_v29 = vmul.f32 %v519_v23, %v319_v27  ;;  %v321_v30 = vpop.f32.mrb[1].mxu0 }
 0x141   :  { %v524_v32 = vmul.f32 %v520_v26, %v321_v30 }
 0x142   :  { %527 = vst [vmem:[#allocation8] sm:$0xff] %v523_v29  ;;  %v390_v34 = vpop.f32.mrb[0].mxu1 }
 0x143   :  { %v525_v36 = vmul.f32 %v521_v28, %v390_v34  ;;  %528 = vst [vmem:[#allocation8 + $0x8] sm:$0xff] %v524_v32  ;;  %v392_v33 = vpop.f32.mrb[1].mxu1 }
 0x144   :  { %v526_v37 = vmul.f32 %v522_v31, %v392_v33 }
 0x145   :  { %529 = vst [vmem:[#allocation8 + $0x10] sm:$0xff] %v525_v36 }
 0x146   :  { %530 = vst [vmem:[#allocation8 + $0x18] sm:$0xff] %v526_v37 }
 0x147   :  { %752 = shalt.err (!%p749_p0)
}
 0x148   :  { %s753_s23 = scalar_lea.hbm %s1026_s3, 512 }
 0x149   :  { %p754_p1 = scmp.ne.s32.totalorder %s1026_s3, %s753_s23  ;;  %p757_p2 = scmp.lt.u32.totalorder %s753_s23, %s1026_s3 }
 0x14b   :  { %p759_p3 = pnand %p757_p2, %p754_p1 }
 0x14d   :  { %762 = shalt.err (!%p759_p3)
}
 0x14e   :  { %540 = dma.vmem_to_hbm [thread:$0]  %s538_s19, 512, %s1026_s3, [#allocation4]  }
 0x14f   :  { %767 = dma.done.wait [#allocation4], 512  }
 0x150   :  { %768 = vsyncadd [#allocation4], 4294966784 }
 0x151   :  { %544 = vsyncpa [#allocation3], 1 }
 0x152   :  { %545 = vsyncpa [#allocation6], 1 }
 0x153   :  { %546 = vsyncpa [#allocation4], 1 }

</bundles_post_ra>
